<compile_context>
chip_gen: v5e
topology: v5e:2x2
jax: 0.10.0
libtpu: 0.0.40
codegen_flags: <defaults>
</compile_context>

<pallas_src>
import functools

import jax
import jax.numpy as jnp
from jax.experimental import pallas as pl
from jax.experimental.pallas import tpu as pltpu


def _round_up(x, m):
    return ((x + m - 1) // m) * m


def _gelu_new(x):
    # HF "gelu_new": 0.5*x*(1+tanh(sqrt(2/pi)*(x+0.044715*x^3))).
    # x*x*x (not jnp.power) keeps the cube on the 4-wide VPU, leaving the single
    # EUP slot free for the tanh.
    c = jnp.asarray(0.7978845608028654, dtype=x.dtype)  # sqrt(2/pi)
    return 0.5 * x * (1.0 + jnp.tanh(c * (x + 0.044715 * (x * x * x))))


def _t5_ff_kernel(x_ref, lnw_ref, wcat_ref, wo_ref, o_ref, norm_ref, acc_ref,
                  *, eps, tf):
    # x_ref:    (tm, D)      token tile (same block for every f step -> stays resident)
    # lnw_ref:  (1, D)       T5LayerNorm scale
    # wcat_ref: (D, 2*tf)    [wi_0 tile | wi_1 tile] for the current f block
    # wo_ref:   (tf, D)      wo tile for the current f block
    # o_ref:    (tm, D)      output tile
    # norm_ref: (tm, D)      cached normed activations (compute dtype), VMEM scratch
    # acc_ref:  (tm, D)      fp32 partial sums of y over the F axis, VMEM scratch
    f = pl.program_id(1)
    nf = pl.num_programs(1)

    @pl.when(f == 0)
    def _init():
        # T5LayerNorm: RMS norm (no mean subtraction), fp32 statistics.
        x = x_ref[...].astype(jnp.float32)
        var = jnp.mean(x * x, axis=-1, keepdims=True)
        nx = x * jax.lax.rsqrt(var + eps) * lnw_ref[...].astype(jnp.float32)
        norm_ref[...] = nx.astype(norm_ref.dtype)
        acc_ref[...] = jnp.zeros_like(acc_ref)

    # Fused gate + linear projection: one MXU pass of width 2*tf, fp32 accumulation.
    h2 = jnp.dot(norm_ref[...], wcat_ref[...], preferred_element_type=jnp.float32)
    # GELU gating is elementwise in F, so per-F-tile accumulation into acc is exact.
    # tf is lane-aligned (multiple of 128) whenever F is tiled, so the slices are free.
    h = (_gelu_new(h2[:, :tf]) * h2[:, tf:]).astype(wo_ref.dtype)
    acc_ref[...] += jnp.dot(h, wo_ref[...], preferred_element_type=jnp.float32)

    @pl.when(f == nf - 1)
    def _finalize():
        # Residual add in fp32 (dropout is identity in eval mode), then cast once.
        o_ref[...] = (x_ref[...].astype(jnp.float32) + acc_ref[...]).astype(o_ref.dtype)


def _estimate_vmem(tm, tf, D, x_sz, w_sz):
    # x tile + out tile (double-buffered), wcat + wo tiles (double-buffered),
    # norm cache + fp32 accumulator scratch.
    act = 2 * 2 * tm * D * x_sz
    weights = 2 * (2 * tf * D + tf * D) * w_sz
    scratch = tm * D * w_sz + tm * D * 4
    return act + weights + scratch


def t5_layer_ff(hidden_states, ln_weight, wi0, wi1, wo, *, eps=1e-6, tm=512, tf=512):
    """hidden_states: [B, S, D]; wi0/wi1: [D, F], wo: [F, D] (already (in, out) layout).

    Pass bf16 weights for bf16 MXU throughput; accumulation is always fp32.
    """
    B, S, D = hidden_states.shape
    F = wi0.shape[1]
    T = B * S

    x_sz = jnp.dtype(hidden_states.dtype).itemsize
    w_sz = jnp.dtype(wi0.dtype).itemsize

    # Token tile: multiple of 8 sublanes, clamped to the (padded) token count.
    tm = min(tm, _round_up(T, 8))
    tm = _round_up(tm, 8)

    # d_ff tile: must divide F, be lane-aligned (multiple of 128) so the in-kernel
    # gate/linear slices stay aligned; otherwise fall back to the full F extent.
    if tf >= F or F % tf != 0 or tf % 128 != 0:
        tf = F

    # Shrink tiles to stay within a conservative VMEM budget (v7x has 64 MiB/TC).
    VMEM_BUDGET = 48 * 1024 * 1024
    while _estimate_vmem(tm, tf, D, x_sz, w_sz) > VMEM_BUDGET and tm > 256:
        tm = _round_up(max(256, tm // 2), 8)
    while (_estimate_vmem(tm, tf, D, x_sz, w_sz) > VMEM_BUDGET
           and tf % 256 == 0 and F % (tf // 2) == 0):
        tf = tf // 2
    n_f = F // tf

    T_pad = _round_up(T, tm)
    x2d = hidden_states.reshape(T, D)
    if T_pad != T:
        # Zero rows normalize to zero and contribute nothing; sliced off below.
        x2d = jnp.pad(x2d, ((0, T_pad - T), (0, 0)))
    lnw = ln_weight.reshape(1, D)

    # Fuse wi_0 / wi_1 per F-tile: columns [f*2tf : f*2tf+tf] hold the wi_0 tile,
    # [f*2tf+tf : (f+1)*2tf] the wi_1 tile, so each grid step loads one (D, 2tf) block.
    wcat = jnp.concatenate(
        [wi0.reshape(D, n_f, tf), wi1.reshape(D, n_f, tf)], axis=2
    ).reshape(D, 2 * F)

    compute_dtype = wcat.dtype
    cost = pl.CostEstimate(
        flops=6 * T * D * F,            # 2*T*D*(2F) for the fused wi dot + 2*T*F*D for wo
        transcendentals=T * F,          # tanh in gelu_new
        bytes_accessed=(2 * T * D * x_sz            # x in, out
                        + (3 * D * F + D) * w_sz),  # wi_0, wi_1, wo, ln weight
    )

    kernel = functools.partial(_t5_ff_kernel, eps=eps, tf=tf)
    out2d = pl.pallas_call(
        kernel,
        out_shape=jax.ShapeDtypeStruct((T_pad, D), hidden_states.dtype),
        grid_spec=pltpu.PrefetchScalarGridSpec(
            num_scalar_prefetch=0,
            grid=(T_pad // tm, n_f),
            in_specs=[
                pl.BlockSpec((tm, D), lambda i, f: (i, 0)),       # x tile
                pl.BlockSpec((1, D), lambda i, f: (0, 0)),        # layer-norm weight
                pl.BlockSpec((D, 2 * tf), lambda i, f: (0, f)),   # [wi_0 | wi_1] tile
                pl.BlockSpec((tf, D), lambda i, f: (f, 0)),       # wo tile
            ],
            out_specs=pl.BlockSpec((tm, D), lambda i, f: (i, 0)),
            scratch_shapes=[
                pltpu.VMEM((tm, D), compute_dtype),   # cached norm_x (per token tile)
                pltpu.VMEM((tm, D), jnp.float32),     # y accumulator over F
            ],
        ),
        compiler_params=pltpu.CompilerParams(
            dimension_semantics=("parallel", "arbitrary"),
            vmem_limit_bytes=64 * 1024 * 1024,
        ),
        cost_estimate=cost,
    )(x2d, lnw, wcat, wo)

    return out2d[:T].reshape(B, S, D)


def _reference(hidden_states, ln_weight, wi0, wi1, wo, eps=1e-6):
    x = hidden_states.astype(jnp.float32)
    var = jnp.mean(x * x, axis=-1, keepdims=True)
    nx = x * jax.lax.rsqrt(var + eps) * ln_weight.astype(jnp.float32)
    g = _gelu_new(nx @ wi0.astype(jnp.float32))
    l = nx @ wi1.astype(jnp.float32)
    y = (g * l) @ wo.astype(jnp.float32)
    return (x + y).astype(hidden_states.dtype)


if __name__ == "__main__":
    # Small config: batch=2, seq=8, d_model=32, d_ff=64
    B, S, D, F = 2, 8, 32, 64
    key = jax.random.PRNGKey(0)
    k_x, k_w0, k_w1, k_wo, k_ln = jax.random.split(key, 5)

    x = jax.random.normal(k_x, (B, S, D), dtype=jnp.float32)
    # nn.Linear(d_model, d_ff).weight is [d_ff, d_model]; we store the transposed
    # (in, out) matrices directly so the kernel does x @ W.
    wi0 = jax.random.normal(k_w0, (D, F), dtype=jnp.float32) * 0.05
    wi1 = jax.random.normal(k_w1, (D, F), dtype=jnp.float32) * 0.05
    wo = jax.random.normal(k_wo, (F, D), dtype=jnp.float32) * 0.05
    # T5LayerNorm weight is ones at init; perturb slightly for a non-trivial test.
    ln_weight = 1.0 + 0.01 * jax.random.normal(k_ln, (D,), dtype=jnp.float32)

    out = t5_layer_ff(x, ln_weight, wi0, wi1, wo, eps=1e-6)
    out = jax.block_until_ready(out)

    ref = _reference(x, ln_weight, wi0, wi1, wo, eps=1e-6)
    assert out.shape == (B, S, D)
    err = float(jnp.max(jnp.abs(out - ref)))
    assert jnp.allclose(out, ref, atol=1e-5, rtol=1e-5), err
    print("KERNEL_OK")
</pallas_src>

<mosaic_0001>
module attributes {stable_mosaic.version = 11 : i64} {
  func.func @_t5_ff_kernel(%arg0: i32, %arg1: i32, %arg2: memref<16x32xf32, #tpu.memory_space<vmem>>, %arg3: memref<1x32xf32, #tpu.memory_space<vmem>>, %arg4: memref<32x128xf32, #tpu.memory_space<vmem>>, %arg5: memref<64x32xf32, #tpu.memory_space<vmem>>, %arg6: memref<16x32xf32, #tpu.memory_space<vmem>>, %arg7: memref<16x32xf32, #tpu.memory_space<vmem>>, %arg8: memref<16x32xf32, #tpu.memory_space<vmem>>) attributes {dimension_semantics = [#tpu.dimension_semantics<parallel>, #tpu.dimension_semantics<arbitrary>], iteration_bounds = array<i64: 1, 1>, scalar_prefetch = 0 : i64, scratch_operands = 2 : i64, tpu.core_type = #tpu.core_type<tc>, window_params = [{transform_indices = @transform_0, window_bounds = array<i64: 16, 32>}, {pipeline_mode = #tpu.pipeline_mode<synchronous>, transform_indices = @transform_1, window_bounds = array<i64: 1, 32>}, {transform_indices = @transform_2, window_bounds = array<i64: 32, 128>}, {transform_indices = @transform_3, window_bounds = array<i64: 64, 32>}, {transform_indices = @transform_4, window_bounds = array<i64: 16, 32>}]} {
    %c0_i32 = arith.constant 0 : i32
    %0 = arith.cmpi eq, %arg1, %c0_i32 : i32
    %1 = arith.extui %0 : i1 to i32
    %c0_i32_0 = arith.constant 0 : i32
    %2 = arith.cmpi ne, %1, %c0_i32_0 : i32
    scf.if %2 {
      %c0_17 = arith.constant 0 : index
      %c0_18 = arith.constant 0 : index
      %30 = vector.load %arg2[%c0_17, %c0_18] : memref<16x32xf32, #tpu.memory_space<vmem>>, vector<16x32xf32>
      %31 = arith.mulf %30, %30 : vector<16x32xf32>
      %cst_19 = arith.constant dense<0.000000e+00> : vector<16xf32>
      %32 = vector.multi_reduction <add>, %31, %cst_19 [1] : vector<16x32xf32> to vector<16xf32>
      %33 = vector.shape_cast %32 : vector<16xf32> to vector<16x1xf32>
      %cst_20 = arith.constant 3.200000e+01 : f32
      %34 = vector.broadcast %cst_20 : f32 to vector<16x1xf32>
      %35 = arith.divf %33, %34 : vector<16x1xf32>
      %cst_21 = arith.constant 9.99999997E-7 : f32
      %36 = vector.broadcast %cst_21 : f32 to vector<16x1xf32>
      %37 = arith.addf %35, %36 : vector<16x1xf32>
      %38 = math.rsqrt %37 : vector<16x1xf32>
      %39 = vector.broadcast %38 : vector<16x1xf32> to vector<16x32xf32>
      %40 = arith.mulf %30, %39 : vector<16x32xf32>
      %c0_22 = arith.constant 0 : index
      %c0_23 = arith.constant 0 : index
      %41 = vector.load %arg3[%c0_22, %c0_23] : memref<1x32xf32, #tpu.memory_space<vmem>>, vector<1x32xf32>
      %42 = vector.broadcast %41 : vector<1x32xf32> to vector<16x32xf32>
      %43 = arith.mulf %40, %42 : vector<16x32xf32>
      %c0_24 = arith.constant 0 : index
      %c0_25 = arith.constant 0 : index
      %44 = vector.load %arg7[%c0_24, %c0_25] : memref<16x32xf32, #tpu.memory_space<vmem>>, vector<16x32xf32>
      tpu.vector_store %arg7[%c0_24, %c0_25], %43 {strides = array<i32>} : memref<16x32xf32, #tpu.memory_space<vmem>>, vector<16x32xf32>,
      %cst_26 = arith.constant 0.000000e+00 : f32
      %45 = vector.broadcast %cst_26 : f32 to vector<16x32xf32>
      %c0_27 = arith.constant 0 : index
      %c0_28 = arith.constant 0 : index
      %46 = vector.load %arg8[%c0_27, %c0_28] : memref<16x32xf32, #tpu.memory_space<vmem>>, vector<16x32xf32>
      tpu.vector_store %arg8[%c0_27, %c0_28], %45 {strides = array<i32>} : memref<16x32xf32, #tpu.memory_space<vmem>>, vector<16x32xf32>,
    } else {
    }
    %c0 = arith.constant 0 : index
    %c0_1 = arith.constant 0 : index
    %3 = vector.load %arg7[%c0, %c0_1] : memref<16x32xf32, #tpu.memory_space<vmem>>, vector<16x32xf32>
    %c0_2 = arith.constant 0 : index
    %c0_3 = arith.constant 0 : index
    %4 = vector.load %arg4[%c0_2, %c0_3] : memref<32x128xf32, #tpu.memory_space<vmem>>, vector<32x128xf32>
    %cst = arith.constant dense<0.000000e+00> : vector<16x128xf32>
    %5 = tpu.matmul %3, %4, %cst {dimension_numbers = #tpu.dot_dimension_numbers<[1], [0], [0], [1], [0, 0, 1, 1], [], []>} : vector<16x32xf32>, vector<32x128xf32>, vector<16x128xf32> -> vector<16x128xf32>
    %6 = vector.extract_strided_slice %5 {offsets = [0, 0], sizes = [16, 64], strides = [1, 1]} : vector<16x128xf32> to vector<16x64xf32>
    %cst_4 = arith.constant 5.000000e-01 : f32
    %7 = vector.broadcast %cst_4 : f32 to vector<16x64xf32>
    %8 = arith.mulf %7, %6 : vector<16x64xf32>
    %9 = arith.mulf %6, %6 : vector<16x64xf32>
    %10 = arith.mulf %9, %6 : vector<16x64xf32>
    %cst_5 = arith.constant 4.471500e-02 : f32
    %11 = vector.broadcast %cst_5 : f32 to vector<16x64xf32>
    %12 = arith.mulf %11, %10 : vector<16x64xf32>
    %13 = arith.addf %6, %12 : vector<16x64xf32>
    %cst_6 = arith.constant 0.797884583 : f32
    %14 = vector.broadcast %cst_6 : f32 to vector<16x64xf32>
    %15 = arith.mulf %14, %13 : vector<16x64xf32>
    %16 = math.tanh %15 : vector<16x64xf32>
    %cst_7 = arith.constant 1.000000e+00 : f32
    %17 = vector.broadcast %cst_7 : f32 to vector<16x64xf32>
    %18 = arith.addf %17, %16 : vector<16x64xf32>
    %19 = arith.mulf %8, %18 : vector<16x64xf32>
    %20 = vector.extract_strided_slice %5 {offsets = [0, 64], sizes = [16, 64], strides = [1, 1]} : vector<16x128xf32> to vector<16x64xf32>
    %21 = arith.mulf %19, %20 : vector<16x64xf32>
    %c0_8 = arith.constant 0 : index
    %c0_9 = arith.constant 0 : index
    %22 = vector.load %arg8[%c0_8, %c0_9] : memref<16x32xf32, #tpu.memory_space<vmem>>, vector<16x32xf32>
    %c0_10 = arith.constant 0 : index
    %c0_11 = arith.constant 0 : index
    %23 = vector.load %arg5[%c0_10, %c0_11] : memref<64x32xf32, #tpu.memory_space<vmem>>, vector<64x32xf32>
    %cst_12 = arith.constant dense<0.000000e+00> : vector<16x32xf32>
    %24 = tpu.matmul %21, %23, %cst_12 {dimension_numbers = #tpu.dot_dimension_numbers<[1], [0], [0], [1], [0, 0, 1, 1], [], []>} : vector<16x64xf32>, vector<64x32xf32>, vector<16x32xf32> -> vector<16x32xf32>
    %25 = arith.addf %22, %24 : vector<16x32xf32>
    %c0_13 = arith.constant 0 : index
    %c0_14 = arith.constant 0 : index
    %26 = vector.load %arg8[%c0_13, %c0_14] : memref<16x32xf32, #tpu.memory_space<vmem>>, vector<16x32xf32>
    tpu.vector_store %arg8[%c0_13, %c0_14], %25 {strides = array<i32>} : memref<16x32xf32, #tpu.memory_space<vmem>>, vector<16x32xf32>,
    %c0_i32_15 = arith.constant 0 : i32
    %27 = arith.cmpi eq, %arg1, %c0_i32_15 : i32
    %28 = arith.extui %27 : i1 to i32
    %c0_i32_16 = arith.constant 0 : i32
    %29 = arith.cmpi ne, %28, %c0_i32_16 : i32
    scf.if %29 {
      %c0_17 = arith.constant 0 : index
      %c0_18 = arith.constant 0 : index
      %30 = vector.load %arg2[%c0_17, %c0_18] : memref<16x32xf32, #tpu.memory_space<vmem>>, vector<16x32xf32>
      %c0_19 = arith.constant 0 : index
      %c0_20 = arith.constant 0 : index
      %31 = vector.load %arg8[%c0_19, %c0_20] : memref<16x32xf32, #tpu.memory_space<vmem>>, vector<16x32xf32>
      %32 = arith.addf %30, %31 : vector<16x32xf32>
      %c0_21 = arith.constant 0 : index
      %c0_22 = arith.constant 0 : index
      %33 = vector.load %arg6[%c0_21, %c0_22] : memref<16x32xf32, #tpu.memory_space<vmem>>, vector<16x32xf32>
      tpu.vector_store %arg6[%c0_21, %c0_22], %32 {strides = array<i32>} : memref<16x32xf32, #tpu.memory_space<vmem>>, vector<16x32xf32>,
    } else {
    }
    return
  }
  func.func @transform_0(%arg0: i32, %arg1: i32) -> (i32, i32) {
    %c0_i32 = arith.constant 0 : i32
    %c0_i32_0 = arith.constant 0 : i32
    return %arg0, %c0_i32 : i32, i32
  }
  func.func @transform_1(%arg0: i32, %arg1: i32) -> (i32, i32) {
    %c0_i32 = arith.constant 0 : i32
    %c0_i32_0 = arith.constant 0 : i32
    %c0_i32_1 = arith.constant 0 : i32
    return %c0_i32, %c0_i32_0 : i32, i32
  }
  func.func @transform_2(%arg0: i32, %arg1: i32) -> (i32, i32) {
    %c0_i32 = arith.constant 0 : i32
    %c0_i32_0 = arith.constant 0 : i32
    return %c0_i32, %arg1 : i32, i32
  }
  func.func @transform_3(%arg0: i32, %arg1: i32) -> (i32, i32) {
    %c0_i32 = arith.constant 0 : i32
    %c0_i32_0 = arith.constant 0 : i32
    return %arg1, %c0_i32 : i32, i32
  }
  func.func @transform_4(%arg0: i32, %arg1: i32) -> (i32, i32) {
    %c0_i32 = arith.constant 0 : i32
    %c0_i32_0 = arith.constant 0 : i32
    return %arg0, %c0_i32 : i32, i32
  }
}

</mosaic_0001>

<bundles_post_ra>
// kernel: tpu_custom_call.1
= control target key start
LH: loop header
LB: loop body
LE: loop exit
PB: predicated region body
PF: predicated region fallthrough
CT: control target
= control target key end

     0   :  { %vm26_vm0 = vcmask 261120   ;;  %s375_s0 = inlined_call_operand.vmem [shape: f32[16,32], index: 0, kind: input, shape index: {}]   ;;  %s376_s1 = inlined_call_operand.vmem [shape: f32[1,32], index: 1, kind: input, shape index: {}]   ;;  %s377_s2 = inlined_call_operand.vmem [shape: f32[32,128], index: 2, kind: input, shape index: {}]   ;;  %s378_s3 = inlined_call_operand.vmem [shape: f32[64,32], index: 3, kind: input, shape index: {}]   ;;  %s379_s4 = inlined_call_operand.hbm [shape: f32[16,32], index: 4, kind: output, shape index: {}]  }
   0x1   :  { %v306_v0 = vld [vmem:[%s375_s0 + $0x8] sm:$0xff] }
   0x2   :  { %v25_v1 = vmul.f32 %v306_v0, %v306_v0 }
   0x3   :  { %9 = vsyncpa [#allocation5], 0  ;;  %v313_v2 = vld [vmem:[%s375_s0] sm:$0xff]  ;;  %v272_v6 = vmov 32.0   ;;  %v81_v12 = vld [vmem:[%s377_s2 + $0x18] sm:$0xff]  ;;  %s273_s14 = smov 64  }
   0x4   :  { %v30_v3 = vsel %vm26_vm0, %v25_v1, 0.0  ;;  %v24_v4 = vmul.f32 %v313_v2, %v313_v2  ;;  %236 = vrcp.f32 %v272_v6  ;;  %217 = vmatpush.msra.mxu3 %v81_v12  ;;  %101 = vmatpush.msra.mxu0 %v81_v12  ;;  %v80_v13 = vld [vmem:[%s377_s2 + $0x10] sm:$0xff]  ;;  %v79_v15 = vld [vmem:[%s377_s2 + $0x8] sm:$0xff]  ;;  %v78_v18 = vld [vmem:[%s377_s2] sm:$0xff]  ;;  %v274_v60 = vmov 0.0   ;;  %s201_s0 = sshll.u32 %s379_s4, 4  ;;  %s202_s0 = int_to_ptr.hbm [resolvable:$true] %s201_s0 }
   0x5   :  { %31 = vadd.xlane.f32.xlu0 %v30_v3  ;;  %v235_v31 = vld [vmem:[%s376_s1] ss:$0 sm:$0xff]  ;;  %v149_v44 = vld [vmem:[%s378_s3 + $0x38] sm:$0xff]  ;;  %v148_v45 = vld [vmem:[%s378_s3 + $0x30] sm:$0xff]  ;;  %75 = vst.msk [vmem:[#allocation3 + $0x8] sm:$0xff] %vm26_vm0, %v274_v60  ;;  %vm150_vm8 = vcmask 523264  }
   0x6   :  { %v27_v5 = vsel %vm26_vm0, %v24_v4, 0.0  ;;  %218 = vmatpush.msra.mxu3 %v80_v13  ;;  %102 = vmatpush.msra.mxu0 %v80_v13  ;;  %v147_v46 = vld [vmem:[%s378_s3 + $0x28] sm:$0xff]  ;;  %v146_v47 = vld [vmem:[%s378_s3 + $0x20] sm:$0xff]  ;;  %v145_v48 = vld [vmem:[%s378_s3 + $0x18] sm:$0xff]  ;;  %74 = vst.msk [vmem:[#allocation3] sm:$0xff] %vm26_vm0, %v274_v60  ;;  %s276_s20 = smov 128  }
   0x7   :  { %221 = vmatpush.msra.mxu2 %v149_v44  ;;  %165 = vmatpush.msra.mxu1 %v149_v44  ;;  %v144_v49 = vld [vmem:[%s378_s3 + $0x10] sm:$0xff]  ;;  %v143_v50 = vld [vmem:[%s378_s3 + $0x8] sm:$0xff]  ;;  %v142_v54 = vld [vmem:[%s378_s3] sm:$0xff]  ;;  %s275_s3 = smov [#allocation4]   ;;  %s277_s21 = smov 8  }
   0x8   :  { %219 = vmatpush.msra.mxu3 %v79_v15  ;;  %103 = vmatpush.msra.mxu0 %v79_v15  ;;  %s199_s17 = sshll.u32 %s275_s3, 4  ;;  %s200_s17 = int_to_ptr.vmem [resolvable:$true] %s199_s17 }
   0x9   :  { %222 = vmatpush.msra.mxu2 %v148_v45  ;;  %166 = vmatpush.msra.mxu1 %v148_v45 }
   0xa   :  { %v237_v7 = vpop.eup %236  ;;  %220 = vmatpush.msra.mxu3 %v78_v18  ;;  %104 = vmatpush.msra.mxu0 %v78_v18 }
   0xb   :  { %v34_v8 = vmul.f32 32.0, %v237_v7  ;;  %vm38_vm1 = vweird.f32 %v237_v7  ;;  %223 = vmatpush.msra.mxu2 %v147_v46  ;;  %167 = vmatpush.msra.mxu1 %v147_v46 }
   0xc   :  { %v141_v15 = vld [vmem:[#allocation3 + $0x8] sm:$0xff] }
   0xd   :  { %28 = vadd.xlane.f32.xlu0 %v27_v5  ;;  %v35_v9 = vsub.f32 1.0, %v34_v8  ;;  %224 = vmatpush.msra.mxu2 %v146_v47 }
   0xe   :  { %168 = vmatpush.msra.mxu1 %v146_v47 }
   0xf   :  { %v36_v10 = vmul.f32 %v237_v7, %v35_v9  ;;  %225 = vmatpush.msra.mxu2 %v145_v48 }
  0x10   :  { %169 = vmatpush.msra.mxu1 %v145_v48 }
  0x11   :  { %v37_v11 = vadd.f32 %v237_v7, %v36_v10  ;;  %226 = vmatpush.msra.mxu2 %v144_v49 }
  0x12   :  { %170 = vmatpush.msra.mxu1 %v144_v49 }
  0x13   :  { %v39_v14 = vsel %vm38_vm1, %v237_v7, %v37_v11  ;;  %227 = vmatpush.msra.mxu2 %v143_v50 }
  0x14   :  { %171 = vmatpush.msra.mxu1 %v143_v50 }
  0x15   :  { %228 = vmatpush.msra.mxu2 %v142_v54 }
  0x16   :  { %172 = vmatpush.msra.mxu1 %v142_v54 }
  0x78   :  { %v32_v16 = vpop.xlane.xlu0 %31 }
  0x79   :  { %v41_v17 = vmul.f32 %v39_v14, %v32_v16 }
  0x7b   :  { %v43_v19 = vadd.f32 1e-06, %v41_v17  ;;  %v140_v17 = vld [vmem:[#allocation3] sm:$0xff] }
  0x7d   :  { %238 = vrsqrt.f32 %v43_v19  ;;  %vm60_vm3 = vweird.f32 %v43_v19 }
  0x80   :  { %v29_v20 = vpop.xlane.xlu0 %28 }
  0x81   :  { %v40_v21 = vmul.f32 %v39_v14, %v29_v20 }
  0x83   :  { %v239_v22 = vpop.eup %238  ;;  %v42_v23 = vadd.f32 1e-06, %v40_v21 }
  0x84   :  { %v55_v24 = vmul.f32 %v239_v22, %v43_v19  ;;  %vm61_vm2 = vweird.f32 %v239_v22 }
  0x85   :  { %240 = vrsqrt.f32 %v42_v23  ;;  %vm62_vm4 = vmor %vm60_vm3, %vm61_vm2  ;;  %vm50_vm5 = vweird.f32 %v42_v23 }
  0x86   :  { %v56_v25 = vmul.f32 %v239_v22, %v55_v24 }
  0x88   :  { %v57_v26 = vmul.f32 0.5, %v56_v25 }
  0x8a   :  { %v58_v27 = vsub.f32 1.5, %v57_v26 }
  0x8b   :  { %v241_v28 = vpop.eup %240 }
  0x8c   :  { %v59_v29 = vmul.f32 %v239_v22, %v58_v27  ;;  %v45_v30 = vmul.f32 %v241_v28, %v42_v23  ;;  %vm51_vm6 = vweird.f32 %v241_v28 }
  0x8d   :  { %vm52_vm7 = vmor %vm50_vm5, %vm51_vm6 }
  0x8e   :  { %v63_v32 = vsel %vm62_vm4, %v239_v22, %v59_v29  ;;  %v46_v33 = vmul.f32 %v241_v28, %v45_v30 }
  0x8f   :  { %v65_v34 = vmul.f32 %v63_v32, %v306_v0 }
  0x90   :  { %v47_v35 = vmul.f32 0.5, %v46_v33 }
  0x91   :  { %v71_v36 = vmul.f32 %v235_v31, %v65_v34 }
  0x92   :  { %v48_v37 = vsub.f32 1.5, %v47_v35 }
  0x93   :  { %73 = vst.msk [vmem:[#allocation2 + $0x8] sm:$0xff] %vm26_vm0, %v71_v36 }
  0x94   :  { %v49_v38 = vmul.f32 %v241_v28, %v48_v37 }
  0x96   :  { %v53_v39 = vsel %vm52_vm7, %v241_v28, %v49_v38 }
  0x97   :  { %v64_v40 = vmul.f32 %v53_v39, %v313_v2 }
  0x99   :  { %v70_v41 = vmul.f32 %v235_v31, %v64_v40 }
  0x9a   :  { %v77_v42 = vld [vmem:[#allocation2 + $0x8] sm:$0xff] }
  0x9b   :  { %72 = vst.msk [vmem:[#allocation2] sm:$0xff] %vm26_vm0, %v70_v41  ;;  %214 = vmatmul.msk.f32.vlgmr.msra.gmra.mxu3 %vm26_vm0, %v77_v42 }
  0xa2   :  { %v76_v43 = vld [vmem:[#allocation2] sm:$0xff] }
  0xa3   :  { %213 = vmatmul.msk.f32.vlgmr.msra.gmra.mxu0 %vm26_vm0, %v76_v43 }
 0x11e   :  { %v109_v51 = vpop.f32.mrf.mxu3 }
 0x11f   :  { %134 = vrot.lane.b32.xlu1 %v109_v51, %s273_s14  ;;  %v115_v53 = vmul.f32 %v109_v51, %v109_v51  ;;  %v113_v5 = vmul.f32 0.5, %v109_v51 }
 0x120   :  { %v106_v52 = vpop.f32.mrf.mxu0 }
 0x121   :  { %v117_v55 = vmul.f32 %v115_v53, %v109_v51  ;;  %v114_v57 = vmul.f32 %v106_v52, %v106_v52  ;;  %v112_v11 = vmul.f32 0.5, %v106_v52 }
 0x123   :  { %v119_v56 = vmul.f32 0.044715, %v117_v55  ;;  %v116_v59 = vmul.f32 %v114_v57, %v106_v52 }
 0x125   :  { %v121_v58 = vadd.f32 %v119_v56, %v109_v51  ;;  %v118_v62 = vmul.f32 0.044715, %v116_v59 }
 0x127   :  { %132 = vrot.lane.b32.xlu1 %v106_v52, %s273_s14  ;;  %v123_v61 = vmul.f32 0.7978846, %v121_v58  ;;  %v120_v63 = vadd.f32 %v118_v62, %v106_v52 }
 0x129   :  { %242 = vtanh.f32 %v123_v61  ;;  %v122_v1 = vmul.f32 0.7978846, %v120_v63 }
 0x12b   :  { %244 = vtanh.f32 %v122_v1 }
 0x12f   :  { %v243_v3 = vpop.eup %242 }
 0x130   :  { %v127_v4 = vadd.f32 1.0, %v243_v3 }
 0x131   :  { %v245_v7 = vpop.eup %244 }
 0x132   :  { %v129_v6 = vmul.f32 %v127_v4, %v113_v5  ;;  %v126_v10 = vadd.f32 1.0, %v245_v7 }
 0x134   :  { %v128_v12 = vmul.f32 %v126_v10, %v112_v11 }
 0x191   :  { %v135_v8 = vpop.permute.xlu1 %134 }
 0x192   :  { %v139_v9 = vmul.f32 %v135_v8, %v129_v6 }
 0x194   :  { %216 = vmatmul.msk.f32.vlgmr.msra.gmra.mxu2 %vm150_vm8, %v139_v9 }
 0x199   :  { %v133_v13 = vpop.permute.xlu1 %132 }
 0x19a   :  { %v138_v14 = vmul.f32 %v133_v13, %v128_v12 }
 0x19c   :  { %215 = vmatmul.msk.f32.vlgmr.msra.gmra.mxu1 %vm150_vm8, %v138_v14 }
 0x217   :  { %v177_v16 = vpop.f32.mrf.mxu2 }
 0x218   :  { %v181_v18 = vadd.f32 %v177_v16, %v141_v15 }
 0x219   :  { %v174_v19 = vpop.f32.mrf.mxu1 }
 0x21a   :  { %183 = vst.msk [vmem:[#allocation3 + $0x8] sm:$0xff] %vm26_vm0, %v181_v18  ;;  %v180_v20 = vadd.f32 %v174_v19, %v140_v17 }
 0x21c   :  { %182 = vst.msk [vmem:[#allocation3] sm:$0xff] %vm26_vm0, %v180_v20 }
 0x221   :  { %v190_v21 = vld [vmem:[#allocation3 + $0x8] sm:$0xff] }
 0x222   :  { %v192_v22 = vadd.f32 %v190_v21, %v306_v0 }
 0x223   :  { %v189_v23 = vld [vmem:[#allocation3] sm:$0xff] }
 0x224   :  { %v191_v24 = vadd.f32 %v189_v23, %v313_v2  ;;  %194 = vst.msk [vmem:[#allocation4 + $0x8] sm:$0xff] %vm26_vm0, %v192_v22 }
 0x226   :  { %193 = vst.msk [vmem:[#allocation4] sm:$0xff] %vm26_vm0, %v191_v24 }
 0x227   :  { %207 = dma.vmem_to_hbm [thread:$0]  %s200_s17, 256, %s202_s0, [#allocation5], %s276_s20, %s276_s20, %s277_s21  }
 0x228   :  { %270 = dma.done.wait [#allocation5], 256  }
 0x229   :  { %271 = vsyncadd [#allocation5], 4294967040 }
 0x22a   :  { %212 = vsyncpa [#allocation5], 1 }

</bundles_post_ra>
